<compile_context>
chip_gen: v7x
topology: tpu7x:2x2x1
jax: 0.10.0
libtpu: 0.0.40
codegen_flags: <defaults>
</compile_context>

<pallas_src>
import jax
import jax.numpy as jnp
from jax.experimental import pallas as pl
from jax.experimental.pallas import tpu as pltpu

_MIN_GRID_STEPS = 8          # keep pipelining + 2-TC sharding alive


def _round_up(x: int, m: int) -> int:
    return (x + m - 1) // m * m


def _cdiv(a: int, b: int) -> int:
    return -(-a // b)


def _tile_cap_bytes() -> int:
    """Per-generation tile-size cap (double-buffered in+out = 4x this)."""
    try:
        kind = jax.devices()[0].device_kind.lower()
    except Exception:
        return 2 * 1024 * 1024
    if ("v6" in kind) or ("v7" in kind) or ("7x" in kind):
        return 4 * 1024 * 1024   # v6e/v7x: 32 MiB default scoped VMEM
    return 2 * 1024 * 1024       # v5e & older: 16 MiB default scoped VMEM


def _choose_tiling(M: int, N: int, itemsize: int, cap_bytes: int):
    """Pick a large, lane-dense (sublane,128)-aligned block; no array padding."""
    sub = max(8, 32 // itemsize)          # sublane multiple: 8 f32, 16 bf16
    lane = 128
    n_full = _round_up(N, lane)
    if n_full * sub * itemsize <= cap_bytes:
        bn = n_full                       # full-width rows: widest unmasked vst
    else:
        bn = 8 * lane                     # 1024 lanes; last column block ragged
    grid_n = _cdiv(N, bn)

    # Row budget limited by the tile-size cap.
    rows_budget = max(sub, (cap_bytes // (bn * itemsize)) // sub * sub)
    # Keep enough grid steps for double-buffering overlap + megacore sharding.
    target_m_blocks = max(1, _cdiv(_MIN_GRID_STEPS, grid_n))
    bm_target = _round_up(_cdiv(M, target_m_blocks), sub)
    bm = min(rows_budget, max(sub, bm_target))
    bm = min(bm, _round_up(M, sub))       # never bigger than the (rounded) rows
    return bm, bn


def _potential_loss_kernel(coef_ref, dist_ref, out_ref):
    """Elementwise hot path: out = max(a * dist + b, 0)."""
    a = coef_ref[0]
    b = coef_ref[1]
    x = dist_ref[...].astype(jnp.float32)
    out_ref[...] = jnp.maximum(x * a + b, 0.0).astype(out_ref.dtype)


def potential_loss(threshold, dist, att: bool):
    """Pallas implementation of PotentialLoss.forward(threshold, dist, att)."""
    dist = jnp.asarray(dist)
    if not (dist.dtype == jnp.float32 or dist.dtype == jnp.bfloat16):
        dist = dist.astype(jnp.float32)
    M, N = dist.shape
    itemsize = dist.dtype.itemsize

    # Affine coefficients computed once (threshold may be traced -> SMEM).
    t = jnp.asarray(threshold, jnp.float32)
    if att:                                   # static branch, like PyTorch `if att:`
        a = 1.0 / (2.0 * 1.0 + 0.0 - t)
        b = -t * a
    else:
        a = -1.0 / t
        b = jnp.ones_like(t)
    coef = jnp.stack([a, b]).astype(jnp.float32)   # (2,) scalar prefetch

    bm, bn = _choose_tiling(M, N, itemsize, _tile_cap_bytes())
    grid = (pl.cdiv(M, bm), pl.cdiv(N, bn))

    cost = pl.CostEstimate(
        flops=2 * M * N,
        transcendentals=0,
        bytes_accessed=2 * M * N * itemsize,
    )

    return pl.pallas_call(
        _potential_loss_kernel,
        out_shape=jax.ShapeDtypeStruct((M, N), dist.dtype),
        grid_spec=pltpu.PrefetchScalarGridSpec(
            num_scalar_prefetch=1,            # coef -> SMEM, passed first
            grid=grid,
            in_specs=[
                pl.BlockSpec((bm, bn), lambda i, j, coef_ref: (i, j)),
            ],
            out_specs=pl.BlockSpec((bm, bn), lambda i, j, coef_ref: (i, j)),
        ),
        compiler_params=pltpu.CompilerParams(
            dimension_semantics=("parallel", "parallel")
        ),
        cost_estimate=cost,
    )(coef, dist)


def _ref_potential_loss(threshold, dist, att: bool):
    """Pure-JAX reference mirroring the PyTorch module exactly (f32 math)."""
    x = jnp.asarray(dist).astype(jnp.float32)
    t = jnp.asarray(threshold, jnp.float32)
    if att:
        tmp1 = 1.0 / (2.0 * 1.0 + 0.0 - t)
        tmp2 = -t * tmp1
        tmp = tmp1 * x + tmp2
    else:
        tmp1 = -1.0 / t
        tmp = tmp1 * x + 1.0
    return jnp.maximum(tmp, 0.0).astype(jnp.asarray(dist).dtype)


if __name__ == "__main__":
    key = jax.random.PRNGKey(0)
    threshold = jnp.float32(0.5)

    # Small pairwise-distance-like matrices: tile-aligned, ragged (exercises
    # masked edge blocks), and a larger one (exercises grid-step splitting).
    cases = [
        ((16, 256), jnp.float32),
        ((50, 300), jnp.float32),
        ((256, 1024), jnp.float32),
        ((50, 300), jnp.bfloat16),     # bf16 path: (16,128)-aligned tiles
    ]

    ok = True
    for shape, dtype in cases:
        key, sub = jax.random.split(key)
        dist = jax.random.uniform(sub, shape, dtype=jnp.float32,
                                  minval=0.0, maxval=2.0).astype(dtype)
        for att in (True, False):
            out = jax.block_until_ready(potential_loss(threshold, dist, att))
            ref = _ref_potential_loss(threshold, dist, att)
            tol = 1e-6 if dtype == jnp.float32 else 2e-2
            if out.shape != ref.shape or out.dtype != ref.dtype or not jnp.allclose(
                out.astype(jnp.float32), ref.astype(jnp.float32),
                atol=tol, rtol=tol,
            ):
                ok = False

    if ok:
        print("KERNEL_OK")
    else:
        print("KERNEL_MISMATCH")
</pallas_src>

<mosaic_0001>
module attributes {stable_mosaic.version = 11 : i64} {
  func.func @_potential_loss_kernel(%arg0: i32, %arg1: i32, %arg2: memref<2xf32, #tpu.memory_space<smem>>, %arg3: memref<8x256xf32, #tpu.memory_space<vmem>>, %arg4: memref<8x256xf32, #tpu.memory_space<vmem>>) attributes {dimension_semantics = [#tpu.dimension_semantics<parallel>, #tpu.dimension_semantics<parallel>], iteration_bounds = array<i64: 2, 1>, scalar_prefetch = 1 : i64, scratch_operands = 0 : i64, tpu.core_type = #tpu.core_type<tc>, window_params = [{transform_indices = @transform_0, window_bounds = array<i64: 8, 256>}, {transform_indices = @transform_1, window_bounds = array<i64: 8, 256>}]} {
    %c0 = arith.constant 0 : index
    %0 = memref.load %arg2[%c0] : memref<2xf32, #tpu.memory_space<smem>>
    %c1 = arith.constant 1 : index
    %1 = memref.load %arg2[%c1] : memref<2xf32, #tpu.memory_space<smem>>
    %c0_0 = arith.constant 0 : index
    %c0_1 = arith.constant 0 : index
    %2 = vector.load %arg3[%c0_0, %c0_1] : memref<8x256xf32, #tpu.memory_space<vmem>>, vector<8x256xf32>
    %3 = vector.broadcast %0 : f32 to vector<8x256xf32>
    %4 = arith.mulf %2, %3 : vector<8x256xf32>
    %5 = vector.broadcast %1 : f32 to vector<8x256xf32>
    %6 = arith.addf %4, %5 : vector<8x256xf32>
    %cst = arith.constant 0.000000e+00 : f32
    %7 = vector.broadcast %cst : f32 to vector<8x256xf32>
    %8 = arith.maximumf %6, %7 : vector<8x256xf32>
    %c0_2 = arith.constant 0 : index
    %c0_3 = arith.constant 0 : index
    %9 = vector.load %arg4[%c0_2, %c0_3] : memref<8x256xf32, #tpu.memory_space<vmem>>, vector<8x256xf32>
    tpu.vector_store %arg4[%c0_2, %c0_3], %8 {strides = array<i32>} : memref<8x256xf32, #tpu.memory_space<vmem>>, vector<8x256xf32>,
    return
  }
  func.func @transform_0(%arg0: i32, %arg1: i32, %arg2: memref<2xf32, #tpu.memory_space<smem>>) -> (i32, i32) {
    %c0_i32 = arith.constant 0 : i32
    return %arg0, %arg1 : i32, i32
  }
  func.func @transform_1(%arg0: i32, %arg1: i32, %arg2: memref<2xf32, #tpu.memory_space<smem>>) -> (i32, i32) {
    %c0_i32 = arith.constant 0 : i32
    return %arg0, %arg1 : i32, i32
  }
}

</mosaic_0001>

<bundles_post_ra>
// kernel: tpu_custom_call.1
= control target key start
LH: loop header
LB: loop body
LE: loop exit
PB: predicated region body
PF: predicated region fallthrough
CT: control target
= control target key end

     0   :  { %s682_s0 = inlined_call_operand.hbm [shape: f32[2], index: 0, kind: input, shape index: {}]   ;;  %s683_s1 = inlined_call_operand.hbm [shape: f32[16,256], index: 1, kind: input, shape index: {}]   ;;  %s684_s2 = inlined_call_operand.hbm [shape: f32[16,256], index: 2, kind: output, shape index: {}]  }
   0x1   :  { %s354_s11 = scalar_lea.hbm %s682_s0, 16 }
   0x2   :  { %p355_p0 = scmp.ne.s32.totalorder %s682_s0, %s354_s11  ;;  %p358_p1 = scmp.lt.u32.totalorder %s354_s11, %s682_s0 }
   0x4   :  { %p360_p2 = pnand %p358_p1, %p355_p0 }
   0x6   :  { %363 = shalt.err (!%p360_p2)  }
   0x7   :  { %s480_s16 = smov [#allocation3]  }
   0x8   :  { %8 = dma.hbm_to_smem %s682_s0, 16, %s480_s16, [#allocation2] }
   0x9   :  { %446 = dma.done.wait [#allocation2], 16 }
   0xa   :  { %447 = vsyncadd [#allocation2], 4294967280 }
   0xb   :  { %10 = sfence }
   0xc   :  { %11 = vsyncpa [#allocation5], 0 }
   0xd   :  { %13 = vsyncpa [#allocation5 + $0x1], 0 }
   0xe   :  { %14 = vsyncpa [#allocation6], 0 }
   0xf   :  { %16 = vsyncpa [#allocation6 + $0x1], 0  ;;  %s510_s19 = smov 0   ;;  %s512_s20 = smov 0  }
  0x10   :  { %s514_s21 = smov 0   ;;  %s516_s22 = smov 0  }
  0x11   :  { %s518_s23 = smov 0   ;;  %s520_s24 = smov 0  }
  0x12 LB: > { %s273_s0 = sadd.s32 4294967295, %s478_s24   ;;  %s274_s25 = sadd.s32 4294967294, %s478_s24   ;;  %s478_s24 = sphi %s520_s24, %s22_s24   ;;  %s474_s23 = sphi %s518_s23, %s700_s23   ;;  %s470_s22 = sphi %s516_s22, %s699_s22   ;;  %s466_s21 = sphi %s514_s21, %s698_s21   ;;  %s462_s20 = sphi %s512_s20, %s697_s20   ;;  %s458_s19 = sphi %s510_s19, %s696_s19  }
  0x13   : > { %s34_s26 = sadd.s32 1, %s474_s23  ;;  %s43_s27 = sadd.s32 1, %s466_s21 }
  0x14   : > { %p36_p3 = scmp.ge.s32.totalorder %s34_s26, 2  ;;  %p50_p4 = scmp.ne.s32.totalorder %s466_s21, %s462_s20 }
  0x15   : > { %p51_p5 = scmp.eq.s32.totalorder %s478_s24, 0  ;;  %p56_p6 = scmp.ne.s32.totalorder %s462_s20, %s458_s19 }
  0x16   : > { %s702_s26 = smov (%p36_p3, %s34_s26), 0  ;;  %p57_p8 = scmp.eq.s32.totalorder %s273_s0, 0 }
  0x17   : > { %p551_p7 = por %p51_p5, %p50_p4  ;;  %s38_s29 = ssub.s32 %s474_s23, %s702_s26 }
  0x18   : > { %p82_p9 = scmp.eq.s32.totalorder %s273_s0, 1  ;;  %p41_p10 = scmp.eq.s32.totalorder %s38_s29, 0 }
  0x19   : > { %p557_p11 = por %p57_p8, %p56_p6  ;;  %p88_p13 = scmp.eq.s32.totalorder %s274_s25, 1 }
  0x1a   : > { %p561_p12 = por %p82_p9, %p50_p4  ;;  %p303_p2 = scmp.lt.s32.totalorder %s478_s24, 2 }
  0x1b   : > { %s566_s4 = scalar_select %p41_p10, %s466_s21, %s43_s27  }
  0x1c   : > { %s688_s3 = scalar_select %p561_p12, 1, 0 }
  0x1d   : > { %p568_p0 = por %p88_p13, %p56_p6  ;;  %s108_s6 = sand.u32 1, %s466_s21  }
  0x1e   : > { %s277_s7 = sshll.u32 %s108_s6, 4  ;;  %s289_s8 = sshll.u32 %s474_s23, 8 }
  0x1f   : > { %s689_s5 = scalar_select %p568_p0, 1, 0 }
  0x20   : > { %s579_s11 = scalar_lea.hbm %s683_s1, %s289_s8  ;;  %s112_s12 = scalar_lea.vmem [#allocation4], %s277_s7 }
  0x21   : > { %s122_s13 = sshll.u32 %s112_s12, 4  ;;  %p585_p3 = pnand %p303_p2, %p551_p7  ;;  %s581_s13 = int_to_ptr.vmem [resolvable:$true] %s122_s13 }
  0x22   : > { %s109_s15 = scalar_lea.sflag [#allocation5], %s108_s6  ;;  %s364_s16 = scalar_lea.hbm %s579_s11, 256 }
  0x23   : > { %p365_p6 = scmp.ne.s32.totalorder %s579_s11, %s364_s16  ;;  %p366_p8 = pneg %p585_p3 }
  0x24   : > { %s369_s0 = scalar_lea.hbm %s683_s1, 512  ;;  %p370_p7 = scmp.lt.u32.totalorder %s579_s11, %s683_s1 }
  0x25   : > { %p367_p9 = pnand %p366_p8, %p365_p6  ;;  %p371_p13 = scmp.lt.u32.totalorder %s369_s0, %s364_s16 }
  0x26   : > { %p373_p1 = scmp.lt.u32.totalorder %s364_s16, %s579_s11 }
  0x27   : > { %p368_p10 = pneg %p367_p9  ;;  %p372_p2 = por %p371_p13, %p370_p7 }
  0x29   : > { %p374_p4 = por %p373_p1, %p372_p2 }
  0x2b   : > { %p375_p5 = pnand %p374_p4, %p368_p10 }
  0x2d   : > { %378 = shalt.err (!%p375_p5)
}
  0x2e   : > { %s379_s28 = scalar_lea.vmem %s581_s13, 256  ;;  %s481_s29 = smov [#allocation4]  }
  0x2f   : > { %p380_p6 = scmp.ne.s32.totalorder %s581_s13, %s379_s28  ;;  %s384_s6 = sshll.u32 %s481_s29, 4  ;;  %s385_s6 = int_to_ptr.vmem [resolvable:$false] %s384_s6 }
  0x30   : > { %s386_s7 = scalar_lea.vmem %s385_s6, 512  ;;  %p387_p12 = scmp.lt.s32.totalorder %s581_s13, %s385_s6 }
  0x31   : > { %p382_p9 = pnand %p380_p6, %p366_p8  ;;  %p388_p7 = scmp.lt.s32.totalorder %s386_s7, %s379_s28 }
  0x33   : > { %p383_p0 = pneg %p382_p9  ;;  %p389_p13 = por %p388_p7, %p387_p12 }
  0x35   : > { %p390_p1 = pnand %p389_p13, %p383_p0 }
  0x37   : > { %393 = shalt.err (!%p390_p1)
}
  0x38   : > { %298 = dma.hbm_to_vmem [thread:$0]  (!%p585_p3), %s579_s11, 256, %s581_s13, %s109_s15  }
  0x39   : > { %p691_p4 = scmp.lt.s32.totalorder %s478_s24, 3  ;;  %p692_p5 = scmp.ge.s32.totalorder %s478_s24, 1 }
  0x3b   : > { %p128_p8 = pnand %p692_p5, %p691_p4 }
  0x3c   : > { %s621_s8 = sand.u32 (!%p128_p8), 1, %s462_s20  }
  0x3d   : > { %131 = sbr.rel (%p128_p8) target bundleno = 96 (0x60), region = 24  ;;  %s281_s9 = sshll.u32 (!%p128_p8), %s621_s8, 4 }
  0x3e   : > { %s134_s10 = scalar_lea.sflag (!%p128_p8), [#allocation5], %s621_s8  ;;  %s137_s12 = scalar_lea.vmem (!%p128_p8), [#allocation4], %s281_s9 }
  0x44   : > { %449 = dma.done.wait (%p557_p11), %s134_s10, 256  }
  0x45   : > { %451 = vsyncadd (%p557_p11), %s134_s10, 4294967040  ;;  %s158_s11 = sld [smem:[#allocation3]]  ;;  %s283_s13 = sld [smem:[#allocation3 + $0x1]]  ;;  %v160_v0 = vld [vmem:[%s137_s12] sm:$0xff]  ;;  %v161_v3 = vld [vmem:[%s137_s12 + $0x8] sm:$0xff] }
  0x46   : > { %s155_s14 = scalar_lea.vmem [#allocation7], %s281_s9  ;;  %s290_s16 = sshll.u32 %s470_s22, 8 }
  0x47   : > { %s189_s15 = sshll.u32 %s155_s14, 4  ;;  %s635_s18 = scalar_lea.hbm %s684_s2, %s290_s16  ;;  %s630_s15 = int_to_ptr.vmem [resolvable:$true] %s189_s15 }
  0x48   : > { %s173_s0 = scalar_lea.sflag [#allocation6], %s621_s8  ;;  %s394_s25 = scalar_lea.vmem %s630_s15, 256 }
  0x49   : > { %p395_p11 = scmp.ne.s32.totalorder %s630_s15, %s394_s25  ;;  %p693_p12 = scmp.ne.s32.totalorder %s688_s3, 0 }
  0x4a   : > { %s482_s22 = smov [#allocation7]  }
  0x4b   : > { %v162_v1 = vstv %s158_s11  ;;  %v165_v2 = vstv %s283_s13  ;;  %p396_p0 = pnand %p395_p11, %p693_p12  ;;  %s398_s27 = sshll.u32 %s482_s22, 4  ;;  %s399_s27 = int_to_ptr.vmem [resolvable:$false] %s398_s27 }
  0x4c   : > { %v163_v4 = vmul.f32 %v162_v1, %v160_v0  ;;  %v164_v5 = vmul.f32 %v162_v1, %v161_v3  ;;  %s400_s28 = scalar_lea.vmem %s399_s27, 512  ;;  %p401_p10 = scmp.lt.s32.totalorder %s630_s15, %s399_s27 }
  0x4d   : > { %p397_p3 = pneg %p396_p0  ;;  %p402_p2 = scmp.lt.s32.totalorder %s400_s28, %s394_s25 }
  0x4e   : > { %v166_v6 = vadd.f32 %v165_v2, %v163_v4  ;;  %v167_v7 = vadd.f32 %v165_v2, %v164_v5 }
  0x4f   : > { %p403_p6 = por %p402_p2, %p401_p10 }
  0x50   : > { %v168_v8 = vmax.f32 %v166_v6, 0.0  ;;  %v169_v9 = vmax.f32 %v167_v7, 0.0 }
  0x51   : > { %p404_p9 = pnand %p403_p6, %p397_p3 }
  0x52   : > { %170 = vst [vmem:[%s155_s14] sm:$0xff] %v168_v8  ;;  %171 = vst [vmem:[%s155_s14 + $0x8] sm:$0xff] %v169_v9 }
  0x53   : > { %407 = shalt.err (!%p404_p9)
}
  0x54   : > { %s408_s29 = scalar_lea.hbm %s635_s18, 256  ;;  %s412_s8 = scalar_lea.hbm %s684_s2, 512 }
  0x55   : > { %p409_p7 = scmp.ne.s32.totalorder %s635_s18, %s408_s29  ;;  %p413_p4 = scmp.lt.u32.totalorder %s635_s18, %s684_s2 }
  0x56   : > { %p414_p5 = scmp.lt.u32.totalorder %s412_s8, %s408_s29  ;;  %p416_p11 = scmp.lt.u32.totalorder %s408_s29, %s635_s18 }
  0x57   : > { %p410_p13 = pnand %p409_p7, %p693_p12 }
  0x58   : > { %p415_p8 = por %p414_p5, %p413_p4 }
  0x59   : > { %p411_p1 = pneg %p410_p13 }
  0x5a   : > { %p417_p0 = por %p416_p11, %p415_p8 }
  0x5c   : > { %p418_p3 = pnand %p417_p0, %p411_p1 }
  0x5e   : > { %421 = shalt.err (!%p418_p3)
}
  0x5f   : > { %293 = dma.vmem_to_hbm [thread:$0]  (%p693_p12), %s630_s15, 256, %s635_s18, %s173_s0  }
  0x60 PF: > { %s201_s12 = sand.u32 1, %s458_s19   ;;  %p694_p10 = scmp.ne.s32.totalorder %s689_s5, 0 }
  0x61   : > { %p695_p2 = scmp.ge.s32.totalorder %s478_s24, 2  ;;  %s202_s11 = scalar_lea.sflag [#allocation6], %s201_s12 }
  0x63   : > { %p300_p6 = pnand %p695_p2, %p694_p10 }
  0x65   : > { %453 = dma.done.wait (!%p300_p6), %s202_s11, 256  }
  0x66   : > { %455 = vsyncadd (!%p300_p6), %s202_s11, 4294967040  ;;  %s22_s24 = sadd.s32 1, %s478_s24   ;;  %s696_s19 = smov %s462_s20 }
  0x67   : > { %p19_p9 = scmp.ge.s32.totalorder %s22_s24, 4   ;;  %s697_s20 = smov %s466_s21 }
  0x68   : > { %s698_s21 = smov %s566_s4  ;;  %s699_s22 = smov %s474_s23 }
  0x69   : > { %s700_s23 = smov %s702_s26  ;;  %21 = sbr.rel (!%p19_p9) target bundleno = 18 (0x12), region = 69 }
  0x70   :  { %207 = vsyncpa [#allocation5], 1 }
  0x71   :  { %209 = vsyncpa [#allocation5 + $0x1], 1 }
  0x72   :  { %210 = vsyncpa [#allocation6], 1 }
  0x73   :  { %212 = vsyncpa [#allocation6 + $0x1], 1 }

</bundles_post_ra>
